<compile_context>
chip_gen: v7x
topology: tpu7x:2x2x1
jax: 0.10.0
libtpu: 0.0.40
codegen_flags: <defaults>
</compile_context>

<pallas_src>
import numpy as np
import jax
import jax.numpy as jnp
from jax import lax
from jax.experimental import pallas as pl
from jax.experimental.pallas import tpu as pltpu


def _pick_tile(n, candidates=(512, 256, 128)):
    """Largest lane-dense tile that divides n; fall back to the full axis for small/odd n."""
    for t in candidates:
        if n % t == 0:
            return t
    return n


# ----------------------------------------------------------------------------
# Kernel 1: pairwise squared distances, tiled over query rows AND support cols.
#   d[q, s] = ||p_q||^2 + ||p_s||^2 - 2 <p_q, p_s>      (clamped at 0)
# Support block is consumed in native (3, TS) layout; norms recomputed in-kernel (VPU-trivial).
# ----------------------------------------------------------------------------
def _sqdist_kernel(q_ref, p_ref, d_ref):
    q = q_ref[...]                                               # (TQ, 3)  f32
    p = p_ref[...]                                               # (3, TS)  f32
    cc = jnp.sum(q * q, axis=1, keepdims=True)                   # (TQ, 1)
    pp = jnp.sum(p * p, axis=0, keepdims=True)                   # (1, TS)
    cp = jnp.dot(q, p, preferred_element_type=jnp.float32)       # (TQ, TS) MXU, f32 (kNN ordering)
    d_ref[...] = jnp.maximum(cc + pp - 2.0 * cp, 0.0)


def pairwise_sqdist(pts_q, pts_c, tile_q, tile_s):
    # pts_q: (B, N, 3) query rows;  pts_c: (B, 3, N) support columns (native layout).
    B, N, _ = pts_q.shape
    return pl.pallas_call(
        _sqdist_kernel,
        out_shape=jax.ShapeDtypeStruct((B, N, N), jnp.float32),
        grid=(B, N // tile_q, N // tile_s),
        in_specs=[
            pl.BlockSpec((None, tile_q, 3), lambda b, i, j: (b, i, 0)),
            pl.BlockSpec((None, 3, tile_s), lambda b, i, j: (b, 0, j)),
        ],
        out_specs=pl.BlockSpec((None, tile_q, tile_s), lambda b, i, j: (b, i, j)),
        compiler_params=pltpu.CompilerParams(
            dimension_semantics=("parallel", "parallel", "arbitrary")),
    )(pts_q, pts_c)


# ----------------------------------------------------------------------------
# Kernel 2: fused (r_layer-folded) PointTransformerLayer + e_layer + residual.
# All intermediates are channels-major (C, tile_n); neighbor axis is an unrolled
# loop with an online softmax, so no cross-lane reductions are needed.
# ----------------------------------------------------------------------------
def _point_transformer_kernel(xc_ref, xg_ref, pd_ref,
                              wk_ref, bk_ref, wqv_ref, bqv_ref,
                              wp1_ref, bp1_ref, wp2_ref, bp2_ref,
                              wa1_ref, ba1_ref, wa2_ref, ba2_ref,
                              we_ref, be_ref, o_ref):
    f32 = jnp.float32
    H = wk_ref.shape[0]
    K = xg_ref.shape[0]

    def mm(w_ref_, x, b_ref_):
        w = w_ref_[...]                                          # bf16 weights
        y = jnp.dot(w, x.astype(w.dtype), preferred_element_type=f32)
        return y + b_ref_[...]                                   # f32 bias (out, 1)

    xc = xc_ref[...]                                             # (Cin, T) f32 -- raw feats / identity
    # K is applied to the center feature, Q/V to the grouped neighbors (matches PyTorch module).
    k_feat = mm(wk_ref, xc, bk_ref)                              # (H, T)

    m_run = l_run = acc = None
    for j in range(K):                   # unrolled: K is small; every tensor is lane-dense (lane = T)
        xg_j = xg_ref[j]                                         # (Cin, T) bf16
        pd_j = pd_ref[j]                                         # (3, T)   bf16
        # position_encoding: conv(3->H) -> conv(H->H) -> ReLU (no inner activation)
        delta_j = jnp.maximum(
            mm(wp2_ref, mm(wp1_ref, pd_j, bp1_ref), bp2_ref), 0.0)          # (H, T)
        qv_j = mm(wqv_ref, xg_j, bqv_ref)                        # (2H, T) fused Q|V projection
        q_j = qv_j[:H]
        v_j = qv_j[H:] + delta_j                                 # (H, T)
        # attention_encoding(K - Q + delta): conv -> conv -> ReLU
        s_j = jnp.maximum(
            mm(wa2_ref, mm(wa1_ref, k_feat - q_j + delta_j, ba1_ref), ba2_ref), 0.0)  # (H, T)
        if j == 0:                                               # online softmax over neighbors
            m_run, l_run, acc = s_j, jnp.ones_like(s_j), v_j
        else:
            m_new = jnp.maximum(m_run, s_j)
            alpha = jnp.exp(m_run - m_new)
            p = jnp.exp(s_j - m_new)
            l_run = l_run * alpha + p
            acc = acc * alpha + p * v_j
            m_run = m_new

    out = acc * pl.reciprocal(l_run, approx=True)                # softmax-normalized sum (H, T)
    y = mm(we_ref, out, be_ref)                                  # e_layer -> (Cout, T)
    o_ref[...] = (y + xc).astype(o_ref.dtype)                    # + identity (native (Cout, N) layout)


def point_transformer_fused(feats, grouped_feats, pos_diff, params, tile_n):
    B, C_in, N = feats.shape
    K = grouped_feats.shape[1]
    C_out = params[-2].shape[0]                                  # w_e: (Cout, H)

    def const_spec(arr):
        zeros = (0,) * arr.ndim
        return pl.BlockSpec(arr.shape, lambda b, n: zeros)

    in_specs = [
        pl.BlockSpec((None, C_in, tile_n), lambda b, n: (b, 0, n)),
        pl.BlockSpec((None, K, C_in, tile_n), lambda b, n: (b, 0, 0, n)),
        pl.BlockSpec((None, K, 3, tile_n), lambda b, n: (b, 0, 0, n)),
    ] + [const_spec(p) for p in params]

    return pl.pallas_call(
        _point_transformer_kernel,
        out_shape=jax.ShapeDtypeStruct((B, C_out, N), jnp.float32),
        grid=(B, N // tile_n),
        in_specs=in_specs,
        out_specs=pl.BlockSpec((None, C_out, tile_n), lambda b, n: (b, 0, n)),
        compiler_params=pltpu.CompilerParams(
            dimension_semantics=("parallel", "parallel")),
    )(feats, grouped_feats, pos_diff, *params)


# ----------------------------------------------------------------------------
# Module wrapper
# ----------------------------------------------------------------------------
class PointTransformerBlockPallas:
    def __init__(self, input_dim, output_dim, hidden_dim, num_neighbor, key):
        assert input_dim == output_dim, "residual add requires input_dim == output_dim"
        self.num_neighbor = num_neighbor
        H = hidden_dim

        def conv_params(k, in_c, out_c):
            kw, kb = jax.random.split(k)
            bound = 1.0 / np.sqrt(in_c)
            w = jax.random.uniform(kw, (out_c, in_c), jnp.float32, -bound, bound)
            b = jax.random.uniform(kb, (out_c,), jnp.float32, -bound, bound)
            return w, b

        keys = jax.random.split(key, 9)
        w_r, b_r = conv_params(keys[0], input_dim, H)     # r_layer (folded away below)
        w_p1, b_p1 = conv_params(keys[1], 3, H)           # position_encoding conv1
        w_p2, b_p2 = conv_params(keys[2], H, H)           # position_encoding conv2
        w_q, b_q = conv_params(keys[3], H, H)
        w_k, b_k = conv_params(keys[4], H, H)
        w_v, b_v = conv_params(keys[5], H, H)
        w_a1, b_a1 = conv_params(keys[6], H, H)           # attention_encoding conv1
        w_a2, b_a2 = conv_params(keys[7], H, H)           # attention_encoding conv2
        w_e, b_e = conv_params(keys[8], H, output_dim)    # e_layer

        # Fold r_layer into Q/K/V (exact: plain pointwise conv, no BN/activation in between).
        w_kf = w_k @ w_r
        b_kf = w_k @ b_r + b_k
        w_qvf = jnp.concatenate([w_q @ w_r, w_v @ w_r], axis=0)          # (2H, Cin)
        b_qvf = jnp.concatenate([w_q @ b_r + b_q, w_v @ b_r + b_v], axis=0)

        bf16 = jnp.bfloat16
        col = lambda b: b.reshape(-1, 1).astype(jnp.float32)
        # Weights pre-cast to bf16 (native MXU path); biases stay f32 column vectors.
        self.params = (
            w_kf.astype(bf16), col(b_kf),
            w_qvf.astype(bf16), col(b_qvf),
            w_p1.astype(bf16), col(b_p1),
            w_p2.astype(bf16), col(b_p2),
            w_a1.astype(bf16), col(b_a1),
            w_a2.astype(bf16), col(b_a2),
            w_e.astype(bf16), col(b_e),
        )

    def __call__(self, feats, points):
        # feats: (B, C_in, N), points: (B, 3, N) -- native PyTorch NCW layout, kept end-to-end.
        B, C_in, N = feats.shape
        k_nb = self.num_neighbor
        tile_n = _pick_tile(N, (512, 256, 128))   # sweep 256/512/1024; keep B*N/tile >= 2 TCs busy on v7x
        tile_q = _pick_tile(N, (256, 128))
        tile_s = _pick_tile(N, (512, 256, 128))

        # 1) kNN (self included). Points centered per batch to reduce f32 cancellation in cc+pp-2cp.
        pts_c = points - jnp.mean(points, axis=2, keepdims=True)            # (B, 3, N)
        pts_q = jnp.transpose(pts_c, (0, 2, 1))                             # (B, N, 3)
        dists = pairwise_sqdist(pts_q, pts_c, tile_q, tile_s)               # (B, N, N)
        _, nn_idx = lax.top_k(-dists, k_nb)                                 # (B, N, k)

        # 2) neighbor grouping on RAW feats (Cin channels) -- r_layer is folded into Q/K/V.
        def gather_cn(x_cn, idx_nk):                                        # (C,N),(N,K) -> (K,C,N)
            return jnp.transpose(x_cn[:, idx_nk], (2, 0, 1))
        grouped_feats = jax.vmap(gather_cn)(feats, nn_idx)                  # (B, K, Cin, N)
        grouped_pts = jax.vmap(gather_cn)(points, nn_idx)                   # (B, K, 3, N)
        pos_diff = points[:, None, :, :] - grouped_pts                      # (B, K, 3, N) center - neighbor

        # 3) fused transformer layer + e_layer + residual; grouped operands shipped as bf16.
        out = point_transformer_fused(
            feats,
            grouped_feats.astype(jnp.bfloat16),
            pos_diff.astype(jnp.bfloat16),
            self.params, tile_n)                                            # (B, Cout, N)
        return out, points


if __name__ == "__main__":
    key = jax.random.PRNGKey(0)
    B, C_in, N = 2, 4, 16
    hidden_dim, num_neighbor = 32, 8
    C_out = C_in                                    # residual requires matching dims

    k_feats, k_pts, k_params = jax.random.split(key, 3)
    feats = jax.random.normal(k_feats, (B, C_in, N), jnp.float32)   # PyTorch (B, C, N)
    points = jax.random.normal(k_pts, (B, 3, N), jnp.float32)       # PyTorch (B, 3, N)

    block = PointTransformerBlockPallas(C_in, C_out, hidden_dim, num_neighbor, k_params)
    out_feats, out_points = block(feats, points)
    jax.block_until_ready((out_feats, out_points))

    assert out_feats.shape == (B, C_out, N), out_feats.shape
    assert out_points.shape == (B, 3, N), out_points.shape
    assert bool(jnp.all(jnp.isfinite(out_feats)))
    print("KERNEL_OK")
</pallas_src>

<mosaic_0001>
module attributes {stable_mosaic.version = 11 : i64} {
  func.func @_sqdist_kernel(%arg0: i32, %arg1: i32, %arg2: i32, %arg3: memref<1x16x3xf32, #tpu.memory_space<vmem>>, %arg4: memref<1x3x16xf32, #tpu.memory_space<vmem>>, %arg5: memref<1x16x16xf32, #tpu.memory_space<vmem>>) attributes {dimension_semantics = [#tpu.dimension_semantics<parallel>, #tpu.dimension_semantics<parallel>, #tpu.dimension_semantics<arbitrary>], iteration_bounds = array<i64: 2, 1, 1>, scalar_prefetch = 0 : i64, scratch_operands = 0 : i64, tpu.core_type = #tpu.core_type<tc>, window_params = [{transform_indices = @transform_0, window_bounds = array<i64: 1, 16, 3>}, {transform_indices = @transform_1, window_bounds = array<i64: 1, 3, 16>}, {transform_indices = @transform_2, window_bounds = array<i64: 1, 16, 16>}]} {
    %c0 = arith.constant 0 : index
    %c0_0 = arith.constant 0 : index
    %c0_1 = arith.constant 0 : index
    %0 = vector.load %arg3[%c0, %c0_0, %c0_1] : memref<1x16x3xf32, #tpu.memory_space<vmem>>, vector<1x16x3xf32>
    %1 = vector.shape_cast %0 : vector<1x16x3xf32> to vector<16x3xf32>
    %c0_2 = arith.constant 0 : index
    %c0_3 = arith.constant 0 : index
    %c0_4 = arith.constant 0 : index
    %2 = vector.load %arg4[%c0_2, %c0_3, %c0_4] : memref<1x3x16xf32, #tpu.memory_space<vmem>>, vector<1x3x16xf32>
    %3 = vector.shape_cast %2 : vector<1x3x16xf32> to vector<3x16xf32>
    %4 = arith.mulf %1, %1 : vector<16x3xf32>
    %cst = arith.constant dense<0.000000e+00> : vector<16xf32>
    %5 = vector.multi_reduction <add>, %4, %cst [1] : vector<16x3xf32> to vector<16xf32>
    %6 = vector.shape_cast %5 : vector<16xf32> to vector<16x1xf32>
    %7 = arith.mulf %3, %3 : vector<3x16xf32>
    %cst_5 = arith.constant dense<0.000000e+00> : vector<16xf32>
    %8 = vector.multi_reduction <add>, %7, %cst_5 [0] : vector<3x16xf32> to vector<16xf32>
    %9 = vector.shape_cast %8 : vector<16xf32> to vector<1x16xf32>
    %cst_6 = arith.constant dense<0.000000e+00> : vector<16x16xf32>
    %10 = tpu.matmul %1, %3, %cst_6 {dimension_numbers = #tpu.dot_dimension_numbers<[1], [0], [0], [1], [0, 0, 1, 1], [], []>} : vector<16x3xf32>, vector<3x16xf32>, vector<16x16xf32> -> vector<16x16xf32>
    %11 = vector.broadcast %6 : vector<16x1xf32> to vector<16x16xf32>
    %12 = vector.broadcast %9 : vector<1x16xf32> to vector<16x16xf32>
    %13 = arith.addf %11, %12 : vector<16x16xf32>
    %cst_7 = arith.constant 2.000000e+00 : f32
    %14 = vector.broadcast %cst_7 : f32 to vector<16x16xf32>
    %15 = arith.mulf %14, %10 : vector<16x16xf32>
    %16 = arith.subf %13, %15 : vector<16x16xf32>
    %cst_8 = arith.constant 0.000000e+00 : f32
    %17 = vector.broadcast %cst_8 : f32 to vector<16x16xf32>
    %18 = arith.maximumf %16, %17 : vector<16x16xf32>
    %c0_9 = arith.constant 0 : index
    %c0_10 = arith.constant 0 : index
    %c0_11 = arith.constant 0 : index
    %19 = vector.load %arg5[%c0_9, %c0_10, %c0_11] : memref<1x16x16xf32, #tpu.memory_space<vmem>>, vector<1x16x16xf32>
    %20 = vector.shape_cast %19 : vector<1x16x16xf32> to vector<16x16xf32>
    %21 = vector.shape_cast %18 : vector<16x16xf32> to vector<1x16x16xf32>
    tpu.vector_store %arg5[%c0_9, %c0_10, %c0_11], %21 {strides = array<i32>} : memref<1x16x16xf32, #tpu.memory_space<vmem>>, vector<1x16x16xf32>,
    return
  }
  func.func @transform_0(%arg0: i32, %arg1: i32, %arg2: i32) -> (i32, i32, i32) {
    %c0_i32 = arith.constant 0 : i32
    %c0_i32_0 = arith.constant 0 : i32
    return %arg0, %arg1, %c0_i32 : i32, i32, i32
  }
  func.func @transform_1(%arg0: i32, %arg1: i32, %arg2: i32) -> (i32, i32, i32) {
    %c0_i32 = arith.constant 0 : i32
    %c0_i32_0 = arith.constant 0 : i32
    return %arg0, %c0_i32, %arg2 : i32, i32, i32
  }
  func.func @transform_2(%arg0: i32, %arg1: i32, %arg2: i32) -> (i32, i32, i32) {
    %c0_i32 = arith.constant 0 : i32
    return %arg0, %arg1, %arg2 : i32, i32, i32
  }
}

</mosaic_0001>

<bundles_post_ra>
// kernel: tpu_custom_call.1
= control target key start
LH: loop header
LB: loop body
LE: loop exit
PB: predicated region body
PF: predicated region fallthrough
CT: control target
= control target key end

     0   :  { %7 = vsyncpa [#allocation3], 0  ;;  %s742_s0 = inlined_call_operand.vmem [shape: f32[2,16,3], index: 0, kind: input, shape index: {}]   ;;  %s743_s1 = inlined_call_operand.vmem [shape: f32[2,3,16], index: 1, kind: input, shape index: {}]   ;;  %s744_s2 = inlined_call_operand.hbm [shape: f32[2,16,16], index: 2, kind: output, shape index: {}]  }
   0x1   :  { %9 = vsyncpa [#allocation3 + $0x1], 0  ;;  %s624_s9 = smov 0   ;;  %s626_s10 = smov 0  }
   0x2   :  { %s628_s11 = smov 0   ;;  %s630_s12 = smov 0  }
   0x3   :  { %s632_s13 = smov 0   ;;  %s634_s14 = smov 0  }
   0x4 LB: > { %s442_s15 = sadd.s32 4294967295, %s604_s14   ;;  %s443_s16 = sadd.s32 4294967294, %s604_s14   ;;  %s604_s14 = sphi %s634_s14, %s15_s14   ;;  %s600_s13 = sphi %s632_s13, %s751_s13   ;;  %s596_s12 = sphi %s630_s12, %s750_s12   ;;  %s592_s11 = sphi %s628_s11, %s749_s11   ;;  %s588_s10 = sphi %s626_s10, %s748_s10   ;;  %s584_s9 = sphi %s624_s9, %s747_s9  }
   0x5   : > { %s34_s17 = sadd.s32 1, %s600_s13  ;;  %s101_s18 = sadd.s32 1, %s592_s11 }
   0x6   : > { %p36_p0 = scmp.ge.s32.totalorder %s34_s17, 2  ;;  %p111_p1 = scmp.ne.s32.totalorder %s592_s11, %s588_s10 }
   0x7   : > { %p112_p2 = scmp.eq.s32.totalorder %s442_s15, 1  ;;  %p117_p3 = scmp.ne.s32.totalorder %s588_s10, %s584_s9 }
   0x8   : > { %s753_s17 = smov (%p36_p0, %s34_s17), 0  ;;  %p118_p5 = scmp.eq.s32.totalorder %s443_s16, 1 }
   0x9   : > { %p664_p4 = por %p112_p2, %p111_p1  ;;  %s94_s20 = ssub.s32 %s600_s13, %s753_s17 }
   0xa   : > { %p446_p6 = scmp.ge.s32.totalorder %s604_s14, 1  ;;  %p99_p7 = scmp.eq.s32.totalorder %s94_s20, 0 }
   0xb   : > { %p671_p8 = por %p118_p5, %p117_p3  ;;  %p159_p9 = scmp.lt.s32.totalorder %s604_s14, 3 }
   0xc   : > { %s677_s22 = scalar_select %p99_p7, %s592_s11, %s101_s18  }
   0xd   : > { %p160_p10 = pnand %p446_p6, %p159_p9 }
   0xe   : > { %p193_p11 = scmp.lt.s32.totalorder (!%p160_p10), %s596_s12, 1  ;;  %vm237_vm0 = vcmask (!%p160_p10), 1042432   ;;  %vm215_vm1 = vcmask (!%p160_p10), 23552   ;;  %vm223_vm2 = vcmask (!%p160_p10), 124928   ;;  %s189_s4 = sand.u32 (!%p160_p10), 1, %s588_s10   ;;  %vm324_vm3 = vcmask (!%p160_p10), 130048  }
   0xf   : > { %163 = sbr.rel (%p160_p10) target bundleno = 263 (0x107), region = 28  ;;  %s447_s5 = sshll.u32 (!%p160_p10), %s189_s4, 4 }
  0x10   : > { %s460_s6 = sshll.u32 (!%p160_p10), %s596_s12, 8  ;;  %s191_s7 = scalar_lea.vmem (!%p160_p10), [#allocation2], %s447_s5 }
  0x11   : > { %s344_s8 = sshll.u32 (!%p160_p10), %s191_s7, 4  ;;  %s692_s18 = scalar_lea.hbm (!%p160_p10), %s744_s2, %s460_s6  ;;  %s694_s8 = int_to_ptr.vmem [resolvable:$true] %s344_s8 }
  0x12   : > { %s526_s20 = scalar_lea.vmem (!%p160_p10), %s694_s8, 256 }
  0x13   : > { %p527_p12 = scmp.ne.s32.totalorder (!%p160_p10), %s694_s8, %s526_s20 }
  0x15   : > { %p528_p13 = pnand (!%p160_p10), %p527_p12, %p664_p4 }
  0x16   : > { %s194_s23 = scalar_select %p193_p11, %s596_s12, 1 }
  0x17   : > { %s696_s12 = scalar_lea.sflag [#allocation3], %s189_s4  ;;  %p529_p0 = pneg %p528_p13 }
  0x18   : > { %s450_s24 = sshll.u32 %s194_s23, 2  ;;  %s459_s25 = sshll.u32 %s194_s23, 4 }
  0x19   : > { %s208_s28 = scalar_lea.vmem %s743_s1, %s450_s24  ;;  %s200_s3 = scalar_lea.vmem %s742_s0, %s459_s25 }
  0x1a   : > { %v212_v0 = vld [vmem:[%s208_s28] sm:$0x7]  ;;  %v211_v2 = vld [vmem:[%s200_s3 + $0x8] sm:$0xff]  ;;  %s606_s23 = smov [#allocation2]  }
  0x1b   : > { %v210_v1 = vld [vmem:[%s200_s3] sm:$0xff]  ;;  %464 = vmatprep.subr.msk.mxu0 %vm237_vm0, %v212_v0  ;;  %v214_v4 = vmul.f32 %v211_v2, %v211_v2  ;;  %v222_v7 = vmul.f32 %v212_v0, %v212_v0  ;;  %s530_s24 = sshll.u32 %s606_s23, 4  ;;  %s531_s24 = int_to_ptr.vmem [resolvable:$false] %s530_s24 }
  0x1c   : > { %v213_v3 = vmul.f32 %v210_v1, %v210_v1  ;;  %466 = vmatprep.mubr.msk.f32.mxu0 %vm215_vm1, %v210_v1  ;;  %465 = vmatpush3.msk.msra.mxu0 %vm237_vm0, %v212_v0  ;;  %s532_s25 = scalar_lea.vmem %s531_s24, 512  ;;  %p533_p1 = scmp.lt.s32.totalorder %s694_s8, %s531_s24 }
  0x1d   : > { %467 = vmatmul.mubr.msk.f32.vlgmr.msra.gmra.mrb[0].mxu0 %vm215_vm1, %v211_v2  ;;  %v219_v6 = vsel %vm215_vm1, %v214_v4, 0.0  ;;  %v224_v8 = vsel %vm223_vm2, %v222_v7, 0.0  ;;  %p534_p2 = scmp.lt.s32.totalorder %s532_s25, %s526_s20 }
  0x1e   : > { %v216_v5 = vsel %vm215_vm1, %v213_v3, 0.0  ;;  %v225_v9 = vrot.slane %v224_v8, 4 }
  0x1f   : > { %217 = vadd.xlane.f32.xlu0 %v216_v5  ;;  %p535_p3 = por %p534_p2, %p533_p1 }
  0x20   : > { %v226_v10 = vadd.f32 %v225_v9, %v224_v8 }
  0x21   : > { %p536_p5 = pnand %p535_p3, %p529_p0 }
  0x22   : > { %v227_v11 = vrot.slane %v226_v10, 2 }
  0x23   : > { %220 = vadd.xlane.f32.xlu0 %v219_v6 }
  0x24   : > { %v228_v12 = vadd.f32 %v227_v11, %v226_v10 }
  0x26   : > { %v229_v14 = vrot.slane %v228_v12, 1 }
  0x28   : > { %v230_v16 = vadd.f32 %v229_v14, %v228_v12 }
  0xac   : > { %v218_v13 = vpop.xlane.xlu0 %217 }
  0xad   : > { %v316_v21 = vadd.f32 %v230_v16, %v218_v13 }
  0xb0   : > { %v221_v15 = vpop.xlane.xlu0 %220 }
  0xb1   : > { %v317_v17 = vadd.f32 %v230_v16, %v221_v15 }
  0xf0   : > { %v468_v18 = vpop.f32.mrb[0].mxu0 }
  0xf1   : > { %v319_v19 = vmul.f32 2.0, %v468_v18  ;;  %v307_v20 = vpop.f32.mrb[1].mxu0 }
  0xf2   : > { %v318_v22 = vmul.f32 2.0, %v307_v20 }
  0xf3   : > { %v321_v23 = vsub.f32 %v317_v17, %v319_v19 }
  0xf4   : > { %v320_v24 = vsub.f32 %v316_v21, %v318_v22 }
  0xf5   : > { %v323_v25 = vmax.f32 %v321_v23, 0.0 }
  0xf6   : > { %v322_v26 = vmax.f32 %v320_v24, 0.0 }
  0xf7   : > { %326 = vst.msk [vmem:[%s191_s7 + $0x8] sm:$0xff] %vm324_vm3, %v323_v25 }
  0xf8   : > { %325 = vst.msk [vmem:[%s191_s7] sm:$0xff] %vm324_vm3, %v322_v26 }
  0xf9   : > { %539 = shalt.err (!%p536_p5)
}
  0xfa   : > { %s540_s26 = scalar_lea.hbm %s692_s18, 256  ;;  %s544_s29 = scalar_lea.hbm %s744_s2, 512 }
  0xfb   : > { %p541_p6 = scmp.ne.s32.totalorder %s692_s18, %s540_s26  ;;  %p545_p10 = scmp.lt.u32.totalorder %s692_s18, %s744_s2 }
  0xfc   : > { %p546_p11 = scmp.lt.u32.totalorder %s544_s29, %s540_s26  ;;  %p548_p13 = scmp.lt.u32.totalorder %s540_s26, %s692_s18 }
  0xfd   : > { %p542_p7 = pnand %p541_p6, %p664_p4 }
  0xfe   : > { %p547_p12 = por %p546_p11, %p545_p10 }
  0xff   : > { %p543_p9 = pneg %p542_p7 }
 0x100   : > { %p549_p0 = por %p548_p13, %p547_p12 }
 0x102   : > { %p550_p1 = pnand %p549_p0, %p543_p9 }
 0x104   : > { %553 = shalt.err (!%p550_p1)
}
 0x105   : > { %s607_s4 = smov 128   ;;  %s608_s5 = smov 8  }
 0x106   : > { %469 = dma.vmem_to_hbm [thread:$0]  (%p664_p4), %s694_s8, 256, %s692_s18, %s696_s12, %s607_s4, %s607_s4, %s608_s5  }
 0x107 PF: > { %p475_p2 = scmp.ge.s32.totalorder %s604_s14, 2  ;;  %s359_s6 = sand.u32 1, %s584_s9  }
 0x108   : > { %s360_s7 = scalar_lea.sflag [#allocation3], %s359_s6 }
 0x109   : > { %p472_p3 = pnand %p475_p2, %p671_p8 }
 0x10b   : > { %579 = dma.done.wait (!%p472_p3), %s360_s7, 256  }
 0x10c   : > { %581 = vsyncadd (!%p472_p3), %s360_s7, 4294967040  ;;  %s15_s14 = sadd.s32 1, %s604_s14   ;;  %s747_s9 = smov %s588_s10 }
 0x10d   : > { %p12_p5 = scmp.ge.s32.totalorder %s15_s14, 4   ;;  %s748_s10 = smov %s592_s11 }
 0x10e   : > { %s749_s11 = smov %s677_s22  ;;  %s750_s12 = smov %s600_s13 }
 0x10f   : > { %s751_s13 = smov %s753_s17  ;;  %14 = sbr.rel (!%p12_p5) target bundleno = 4 (0x4), region = 66 }
 0x116   :  { %365 = vsyncpa [#allocation3], 1 }
 0x117   :  { %367 = vsyncpa [#allocation3 + $0x1], 1 }

</bundles_post_ra>
